<compile_context>
chip_gen: v7x
topology: tpu7x:2x2x1
jax: 0.10.0
libtpu: 0.0.40
codegen_flags: <defaults>
</compile_context>

<pallas_src>
import functools

import jax
import jax.numpy as jnp
from jax.experimental import pallas as pl
from jax.experimental.pallas import tpu as pltpu

SEQ = 3
HIDDEN = 16
INPUT = 1

_G4 = 4 * HIDDEN                              # 64 gate rows
_COL_ROWS = 2 * _G4 + SEQ * HIDDEN + 1        # [W_ih | b_ih+b_hh | W_lin | b_lin] = 177

B_TILE_MAX = 4096                             # per-tile live VMEM ~3 MB


def _cdiv(a, b):
    return -(-a // b)


def _round_up(n, m):
    return _cdiv(n, m) * m


def _choose_tiling(B, b_tile):
    """Pick (b_tile, b_pad, n_tiles) for the 1-D parallel grid over batch."""
    B = max(B, 1)
    if b_tile is not None:
        assert b_tile > 0 and b_tile % 128 == 0, (
            "b_tile must be a positive multiple of 128 (lane width)")
        n_tiles = _cdiv(B, b_tile)
        return b_tile, n_tiles * b_tile, n_tiles

    n_tiles = _cdiv(B, B_TILE_MAX)
    if B > 512:
        # >= 2 tiles and an even tile count so both v7x TensorCores get work
        # (no effect on 1-TC v5e/v6e beyond one extra cheap grid step).
        n_tiles = _round_up(max(n_tiles, 2), 2)
    per_tile = _cdiv(B, n_tiles)
    # Prefer a 256-lane multiple (full MXU column pass on v6e/v7x) only once
    # tiles are big enough that the extra padding is negligible.
    gran = 256 if per_tile >= 1024 else 128
    b_tile = _round_up(per_tile, gran)
    return b_tile, n_tiles * b_tile, n_tiles


def _lstm_kernel(x_ref, whh_ref, col_ref, out_ref):
    """One batch tile of the full forward pass (batch on the lane axis).

    x_ref:    (SEQ, BT)          f32  inputs (input_size=1 squeezed)
    whh_ref:  (4*HIDDEN, HIDDEN) f32  W_hh, gate rows ordered [i, f, o, g]
    col_ref:  (_COL_ROWS, 1)     f32  packed [W_ih | b_ih+b_hh | W_lin | b_lin]
    out_ref:  (1, BT)            f32  lane-dense output
    """
    bt = x_ref.shape[1]
    x = x_ref[...]                                        # (SEQ, BT)
    whh = whh_ref[...]                                    # (64, 16)
    col = col_ref[...]                                    # (177, 1)
    wih = col[0:_G4, :]                                   # (64, 1)
    b = col[_G4:2 * _G4, :]                               # (64, 1)
    wlin = col[2 * _G4:2 * _G4 + SEQ * HIDDEN, :]         # (48, 1)
    blin = col[2 * _G4 + SEQ * HIDDEN:, :]                # (1, 1)

    def sigmoid(z):
        # One EUP push per vreg (tanh) instead of exp + reciprocal.
        return 0.5 * jnp.tanh(0.5 * z) + 0.5

    c = jnp.zeros((HIDDEN, bt), jnp.float32)
    acc = jnp.zeros((HIDDEN, bt), jnp.float32)
    h = None
    for t in range(SEQ):                                  # static unroll (SEQ == 3)
        # Lazy input projection: VPU broadcast computed right before use, so
        # only one (64, BT) gates tensor is live at a time (no spill blow-up).
        gates = wih * x[t:t + 1, :] + b
        if t > 0:                                         # h0 == 0: skip matmul at t=0
            gates = gates + jnp.dot(whh, h, preferred_element_type=jnp.float32)
        sig = sigmoid(gates[0:3 * HIDDEN, :])             # [i, f, o] in one pass
        i_g = sig[0 * HIDDEN:1 * HIDDEN, :]
        f_g = sig[1 * HIDDEN:2 * HIDDEN, :]
        o_g = sig[2 * HIDDEN:3 * HIDDEN, :]
        g_g = jnp.tanh(gates[3 * HIDDEN:4 * HIDDEN, :])
        c = f_g * c + i_g * g_g
        h = o_g * jnp.tanh(c)
        # Linear(48 -> 1) folded into the recurrence: acc += h_t * w_lin[t].
        acc = acc + h * wlin[t * HIDDEN:(t + 1) * HIDDEN, :]

    out_ref[...] = jnp.sum(acc, axis=0, keepdims=True) + blin


@functools.partial(jax.jit, static_argnames=("b_tile",))
def lstm_forward(x, params, b_tile=None):
    """x: (B, SEQ, 1) float32 -> (B, 1) float32."""
    w_ih, w_hh, b_ih, b_hh, w_lin, b_lin = params
    B = x.shape[0]
    b_tile, b_pad, n_tiles = _choose_tiling(B, b_tile)

    # Reorder gate rows [i, f, g, o] -> [i, f, o, g] so the kernel applies one
    # contiguous sigmoid (rows 0:48) and one tanh (rows 48:64).
    perm = jnp.concatenate([
        jnp.arange(0 * HIDDEN, 2 * HIDDEN),   # i, f
        jnp.arange(3 * HIDDEN, 4 * HIDDEN),   # o
        jnp.arange(2 * HIDDEN, 3 * HIDDEN),   # g
    ])
    whh_r = w_hh.astype(jnp.float32)[perm]                              # (64, 16)
    col = jnp.concatenate([
        w_ih.astype(jnp.float32)[perm].reshape(_G4, 1),                 # W_ih
        (b_ih + b_hh).astype(jnp.float32)[perm].reshape(_G4, 1),        # fused bias
        w_lin.astype(jnp.float32).reshape(SEQ * HIDDEN, 1),             # W_lin
        b_lin.astype(jnp.float32).reshape(1, 1),                        # b_lin
    ], axis=0)                                                          # (177, 1)

    # Batch on the lane axis, padded to the tile size.  Under jit the
    # transpose + pad fuse into a single copy.
    xt = x.astype(jnp.float32).reshape(B, SEQ).T                        # (SEQ, B)
    xt = jnp.pad(xt, ((0, 0), (0, b_pad - B)))

    out = pl.pallas_call(
        _lstm_kernel,
        out_shape=jax.ShapeDtypeStruct((1, b_pad), jnp.float32),
        grid_spec=pltpu.PrefetchScalarGridSpec(
            num_scalar_prefetch=0,
            grid=(n_tiles,),
            in_specs=[
                pl.BlockSpec((SEQ, b_tile), lambda i: (0, i)),           # x tile
                pl.BlockSpec((_G4, HIDDEN), lambda i: (0, 0)),           # W_hh
                pl.BlockSpec((_COL_ROWS, 1), lambda i: (0, 0)),          # packed params
            ],
            out_specs=pl.BlockSpec((1, b_tile), lambda i: (0, i)),
        ),
        compiler_params=pltpu.CompilerParams(
            dimension_semantics=("parallel",)),
    )(xt, whh_r, col)

    # Lane-dense (1, b_pad) -> (B, 1); padded lanes are dropped.
    return out[0, :B].reshape(B, 1)


def init_params(key):
    """Deterministic parameter init matching PyTorch shapes:
       lstm.weight_ih_l0 (64,1), weight_hh_l0 (64,16), bias_ih_l0 (64,),
       bias_hh_l0 (64,), linear.weight (1,48), linear.bias (1,)."""
    k = jax.random.split(key, 6)
    s = 1.0 / jnp.sqrt(HIDDEN)
    w_ih = jax.random.uniform(k[0], (4 * HIDDEN, INPUT), jnp.float32, -s, s)
    w_hh = jax.random.uniform(k[1], (4 * HIDDEN, HIDDEN), jnp.float32, -s, s)
    b_ih = jax.random.uniform(k[2], (4 * HIDDEN,), jnp.float32, -s, s)
    b_hh = jax.random.uniform(k[3], (4 * HIDDEN,), jnp.float32, -s, s)
    sl = 1.0 / jnp.sqrt(HIDDEN * SEQ)
    w_lin = jax.random.uniform(k[4], (1, HIDDEN * SEQ), jnp.float32, -sl, sl)
    b_lin = jax.random.uniform(k[5], (1,), jnp.float32, -sl, sl)
    return (w_ih, w_hh, b_ih, b_hh, w_lin, b_lin)


def reference_forward(x, params):
    """Pure-JAX reference mirroring torch LSTM semantics exactly."""
    w_ih, w_hh, b_ih, b_hh, w_lin, b_lin = params
    B = x.shape[0]
    h = jnp.zeros((B, HIDDEN), jnp.float32)
    c = jnp.zeros((B, HIDDEN), jnp.float32)
    outs = []
    for t in range(SEQ):
        xt = x[:, t, :]                                  # (B, 1)
        gates = xt @ w_ih.T + b_ih + h @ w_hh.T + b_hh   # (B, 64)
        i_g = jax.nn.sigmoid(gates[:, 0 * HIDDEN:1 * HIDDEN])
        f_g = jax.nn.sigmoid(gates[:, 1 * HIDDEN:2 * HIDDEN])
        g_g = jnp.tanh(gates[:, 2 * HIDDEN:3 * HIDDEN])
        o_g = jax.nn.sigmoid(gates[:, 3 * HIDDEN:4 * HIDDEN])
        c = f_g * c + i_g * g_g
        h = o_g * jnp.tanh(c)
        outs.append(h)
    seq_out = jnp.stack(outs, axis=1).reshape(B, SEQ * HIDDEN)
    return seq_out @ w_lin.T + b_lin


if __name__ == "__main__":
    key = jax.random.PRNGKey(0)
    kx, kp = jax.random.split(key)
    params = init_params(kp)

    # Small batch (single 128-lane tile), matching the module spec.
    B = 2
    x = jax.random.normal(kx, (B, SEQ, INPUT), jnp.float32)
    out = lstm_forward(x, params)
    jax.block_until_ready(out)
    ref = reference_forward(x, params)
    assert out.shape == (B, 1)
    assert jnp.allclose(out, ref, atol=1e-4, rtol=1e-4)

    # Multi-tile batch with an explicit b_tile override: exercises the
    # "parallel" grid, padding and the constant weight index_maps.
    B2 = 260
    x2 = jax.random.normal(jax.random.PRNGKey(1), (B2, SEQ, INPUT), jnp.float32)
    out2 = lstm_forward(x2, params, b_tile=128)
    jax.block_until_ready(out2)
    ref2 = reference_forward(x2, params)
    assert out2.shape == (B2, 1)
    assert jnp.allclose(out2, ref2, atol=1e-4, rtol=1e-4)

    # Exercises the automatic tile heuristic (even tile count for v7x,
    # 128-lane granularity, padding kept small).
    B3 = 1300
    x3 = jax.random.normal(jax.random.PRNGKey(2), (B3, SEQ, INPUT), jnp.float32)
    out3 = lstm_forward(x3, params)
    jax.block_until_ready(out3)
    ref3 = reference_forward(x3, params)
    assert out3.shape == (B3, 1)
    assert jnp.allclose(out3, ref3, atol=1e-4, rtol=1e-4)

    print("KERNEL_OK")
</pallas_src>

<mosaic_0001>
module attributes {stable_mosaic.version = 11 : i64} {
  func.func @_lstm_kernel(%arg0: i32, %arg1: memref<3x128xf32, #tpu.memory_space<vmem>>, %arg2: memref<64x16xf32, #tpu.memory_space<vmem>>, %arg3: memref<177x1xf32, #tpu.memory_space<vmem>>, %arg4: memref<1x128xf32, #tpu.memory_space<vmem>>) attributes {dimension_semantics = [#tpu.dimension_semantics<parallel>], iteration_bounds = array<i64: 1>, scalar_prefetch = 0 : i64, scratch_operands = 0 : i64, tpu.core_type = #tpu.core_type<tc>, window_params = [{transform_indices = @transform_0, window_bounds = array<i64: 3, 128>}, {pipeline_mode = #tpu.pipeline_mode<synchronous>, transform_indices = @transform_1, window_bounds = array<i64: 64, 16>}, {pipeline_mode = #tpu.pipeline_mode<synchronous>, transform_indices = @transform_2, window_bounds = array<i64: 177, 1>}, {transform_indices = @transform_3, window_bounds = array<i64: 1, 128>}]} {
    %c0 = arith.constant 0 : index
    %c0_0 = arith.constant 0 : index
    %0 = vector.load %arg1[%c0, %c0_0] : memref<3x128xf32, #tpu.memory_space<vmem>>, vector<3x128xf32>
    %c0_1 = arith.constant 0 : index
    %c0_2 = arith.constant 0 : index
    %1 = vector.load %arg2[%c0_1, %c0_2] : memref<64x16xf32, #tpu.memory_space<vmem>>, vector<64x16xf32>
    %c0_3 = arith.constant 0 : index
    %c0_4 = arith.constant 0 : index
    %2 = vector.load %arg3[%c0_3, %c0_4] : memref<177x1xf32, #tpu.memory_space<vmem>>, vector<177x1xf32>
    %3 = vector.extract_strided_slice %2 {offsets = [0, 0], sizes = [64, 1], strides = [1, 1]} : vector<177x1xf32> to vector<64x1xf32>
    %4 = vector.extract_strided_slice %2 {offsets = [64, 0], sizes = [64, 1], strides = [1, 1]} : vector<177x1xf32> to vector<64x1xf32>
    %5 = vector.extract_strided_slice %2 {offsets = [128, 0], sizes = [48, 1], strides = [1, 1]} : vector<177x1xf32> to vector<48x1xf32>
    %6 = vector.extract_strided_slice %2 {offsets = [176, 0], sizes = [1, 1], strides = [1, 1]} : vector<177x1xf32> to vector<1x1xf32>
    %cst = arith.constant 0.000000e+00 : f32
    %7 = vector.broadcast %cst : f32 to vector<16x128xf32>
    %cst_5 = arith.constant 0.000000e+00 : f32
    %8 = vector.broadcast %cst_5 : f32 to vector<16x128xf32>
    %9 = vector.extract_strided_slice %0 {offsets = [0, 0], sizes = [1, 128], strides = [1, 1]} : vector<3x128xf32> to vector<1x128xf32>
    %10 = vector.broadcast %3 : vector<64x1xf32> to vector<64x128xf32>
    %11 = vector.broadcast %9 : vector<1x128xf32> to vector<64x128xf32>
    %12 = arith.mulf %10, %11 : vector<64x128xf32>
    %13 = vector.broadcast %4 : vector<64x1xf32> to vector<64x128xf32>
    %14 = arith.addf %12, %13 : vector<64x128xf32>
    %15 = vector.extract_strided_slice %14 {offsets = [0, 0], sizes = [48, 128], strides = [1, 1]} : vector<64x128xf32> to vector<48x128xf32>
    %cst_6 = arith.constant 5.000000e-01 : f32
    %16 = vector.broadcast %cst_6 : f32 to vector<48x128xf32>
    %17 = arith.mulf %16, %15 : vector<48x128xf32>
    %18 = math.tanh %17 : vector<48x128xf32>
    %cst_7 = arith.constant 5.000000e-01 : f32
    %19 = vector.broadcast %cst_7 : f32 to vector<48x128xf32>
    %20 = arith.mulf %19, %18 : vector<48x128xf32>
    %cst_8 = arith.constant 5.000000e-01 : f32
    %21 = vector.broadcast %cst_8 : f32 to vector<48x128xf32>
    %22 = arith.addf %20, %21 : vector<48x128xf32>
    %23 = vector.extract_strided_slice %22 {offsets = [0, 0], sizes = [16, 128], strides = [1, 1]} : vector<48x128xf32> to vector<16x128xf32>
    %24 = vector.extract_strided_slice %22 {offsets = [16, 0], sizes = [16, 128], strides = [1, 1]} : vector<48x128xf32> to vector<16x128xf32>
    %25 = vector.extract_strided_slice %22 {offsets = [32, 0], sizes = [16, 128], strides = [1, 1]} : vector<48x128xf32> to vector<16x128xf32>
    %26 = vector.extract_strided_slice %14 {offsets = [48, 0], sizes = [16, 128], strides = [1, 1]} : vector<64x128xf32> to vector<16x128xf32>
    %27 = math.tanh %26 : vector<16x128xf32>
    %28 = arith.mulf %24, %7 : vector<16x128xf32>
    %29 = arith.mulf %23, %27 : vector<16x128xf32>
    %30 = arith.addf %28, %29 : vector<16x128xf32>
    %31 = math.tanh %30 : vector<16x128xf32>
    %32 = arith.mulf %25, %31 : vector<16x128xf32>
    %33 = vector.extract_strided_slice %5 {offsets = [0, 0], sizes = [16, 1], strides = [1, 1]} : vector<48x1xf32> to vector<16x1xf32>
    %34 = vector.broadcast %33 : vector<16x1xf32> to vector<16x128xf32>
    %35 = arith.mulf %32, %34 : vector<16x128xf32>
    %36 = arith.addf %8, %35 : vector<16x128xf32>
    %37 = vector.extract_strided_slice %0 {offsets = [1, 0], sizes = [1, 128], strides = [1, 1]} : vector<3x128xf32> to vector<1x128xf32>
    %38 = vector.broadcast %3 : vector<64x1xf32> to vector<64x128xf32>
    %39 = vector.broadcast %37 : vector<1x128xf32> to vector<64x128xf32>
    %40 = arith.mulf %38, %39 : vector<64x128xf32>
    %41 = vector.broadcast %4 : vector<64x1xf32> to vector<64x128xf32>
    %42 = arith.addf %40, %41 : vector<64x128xf32>
    %cst_9 = arith.constant dense<0.000000e+00> : vector<64x128xf32>
    %43 = tpu.matmul %1, %32, %cst_9 {dimension_numbers = #tpu.dot_dimension_numbers<[1], [0], [0], [1], [0, 0, 1, 1], [], []>} : vector<64x16xf32>, vector<16x128xf32>, vector<64x128xf32> -> vector<64x128xf32>
    %44 = arith.addf %42, %43 : vector<64x128xf32>
    %45 = vector.extract_strided_slice %44 {offsets = [0, 0], sizes = [48, 128], strides = [1, 1]} : vector<64x128xf32> to vector<48x128xf32>
    %cst_10 = arith.constant 5.000000e-01 : f32
    %46 = vector.broadcast %cst_10 : f32 to vector<48x128xf32>
    %47 = arith.mulf %46, %45 : vector<48x128xf32>
    %48 = math.tanh %47 : vector<48x128xf32>
    %cst_11 = arith.constant 5.000000e-01 : f32
    %49 = vector.broadcast %cst_11 : f32 to vector<48x128xf32>
    %50 = arith.mulf %49, %48 : vector<48x128xf32>
    %cst_12 = arith.constant 5.000000e-01 : f32
    %51 = vector.broadcast %cst_12 : f32 to vector<48x128xf32>
    %52 = arith.addf %50, %51 : vector<48x128xf32>
    %53 = vector.extract_strided_slice %52 {offsets = [0, 0], sizes = [16, 128], strides = [1, 1]} : vector<48x128xf32> to vector<16x128xf32>
    %54 = vector.extract_strided_slice %52 {offsets = [16, 0], sizes = [16, 128], strides = [1, 1]} : vector<48x128xf32> to vector<16x128xf32>
    %55 = vector.extract_strided_slice %52 {offsets = [32, 0], sizes = [16, 128], strides = [1, 1]} : vector<48x128xf32> to vector<16x128xf32>
    %56 = vector.extract_strided_slice %44 {offsets = [48, 0], sizes = [16, 128], strides = [1, 1]} : vector<64x128xf32> to vector<16x128xf32>
    %57 = math.tanh %56 : vector<16x128xf32>
    %58 = arith.mulf %54, %30 : vector<16x128xf32>
    %59 = arith.mulf %53, %57 : vector<16x128xf32>
    %60 = arith.addf %58, %59 : vector<16x128xf32>
    %61 = math.tanh %60 : vector<16x128xf32>
    %62 = arith.mulf %55, %61 : vector<16x128xf32>
    %63 = vector.extract_strided_slice %5 {offsets = [16, 0], sizes = [16, 1], strides = [1, 1]} : vector<48x1xf32> to vector<16x1xf32>
    %64 = vector.broadcast %63 : vector<16x1xf32> to vector<16x128xf32>
    %65 = arith.mulf %62, %64 : vector<16x128xf32>
    %66 = arith.addf %36, %65 : vector<16x128xf32>
    %67 = vector.extract_strided_slice %0 {offsets = [2, 0], sizes = [1, 128], strides = [1, 1]} : vector<3x128xf32> to vector<1x128xf32>
    %68 = vector.broadcast %3 : vector<64x1xf32> to vector<64x128xf32>
    %69 = vector.broadcast %67 : vector<1x128xf32> to vector<64x128xf32>
    %70 = arith.mulf %68, %69 : vector<64x128xf32>
    %71 = vector.broadcast %4 : vector<64x1xf32> to vector<64x128xf32>
    %72 = arith.addf %70, %71 : vector<64x128xf32>
    %cst_13 = arith.constant dense<0.000000e+00> : vector<64x128xf32>
    %73 = tpu.matmul %1, %62, %cst_13 {dimension_numbers = #tpu.dot_dimension_numbers<[1], [0], [0], [1], [0, 0, 1, 1], [], []>} : vector<64x16xf32>, vector<16x128xf32>, vector<64x128xf32> -> vector<64x128xf32>
    %74 = arith.addf %72, %73 : vector<64x128xf32>
    %75 = vector.extract_strided_slice %74 {offsets = [0, 0], sizes = [48, 128], strides = [1, 1]} : vector<64x128xf32> to vector<48x128xf32>
    %cst_14 = arith.constant 5.000000e-01 : f32
    %76 = vector.broadcast %cst_14 : f32 to vector<48x128xf32>
    %77 = arith.mulf %76, %75 : vector<48x128xf32>
    %78 = math.tanh %77 : vector<48x128xf32>
    %cst_15 = arith.constant 5.000000e-01 : f32
    %79 = vector.broadcast %cst_15 : f32 to vector<48x128xf32>
    %80 = arith.mulf %79, %78 : vector<48x128xf32>
    %cst_16 = arith.constant 5.000000e-01 : f32
    %81 = vector.broadcast %cst_16 : f32 to vector<48x128xf32>
    %82 = arith.addf %80, %81 : vector<48x128xf32>
    %83 = vector.extract_strided_slice %82 {offsets = [0, 0], sizes = [16, 128], strides = [1, 1]} : vector<48x128xf32> to vector<16x128xf32>
    %84 = vector.extract_strided_slice %82 {offsets = [16, 0], sizes = [16, 128], strides = [1, 1]} : vector<48x128xf32> to vector<16x128xf32>
    %85 = vector.extract_strided_slice %82 {offsets = [32, 0], sizes = [16, 128], strides = [1, 1]} : vector<48x128xf32> to vector<16x128xf32>
    %86 = vector.extract_strided_slice %74 {offsets = [48, 0], sizes = [16, 128], strides = [1, 1]} : vector<64x128xf32> to vector<16x128xf32>
    %87 = math.tanh %86 : vector<16x128xf32>
    %88 = arith.mulf %84, %60 : vector<16x128xf32>
    %89 = arith.mulf %83, %87 : vector<16x128xf32>
    %90 = arith.addf %88, %89 : vector<16x128xf32>
    %91 = math.tanh %90 : vector<16x128xf32>
    %92 = arith.mulf %85, %91 : vector<16x128xf32>
    %93 = vector.extract_strided_slice %5 {offsets = [32, 0], sizes = [16, 1], strides = [1, 1]} : vector<48x1xf32> to vector<16x1xf32>
    %94 = vector.broadcast %93 : vector<16x1xf32> to vector<16x128xf32>
    %95 = arith.mulf %92, %94 : vector<16x128xf32>
    %96 = arith.addf %66, %95 : vector<16x128xf32>
    %cst_17 = arith.constant dense<0.000000e+00> : vector<128xf32>
    %97 = vector.multi_reduction <add>, %96, %cst_17 [0] : vector<16x128xf32> to vector<128xf32>
    %98 = vector.shape_cast %97 : vector<128xf32> to vector<1x128xf32>
    %99 = vector.broadcast %6 : vector<1x1xf32> to vector<1x128xf32>
    %100 = arith.addf %98, %99 : vector<1x128xf32>
    %c0_18 = arith.constant 0 : index
    %c0_19 = arith.constant 0 : index
    %101 = vector.load %arg4[%c0_18, %c0_19] : memref<1x128xf32, #tpu.memory_space<vmem>>, vector<1x128xf32>
    tpu.vector_store %arg4[%c0_18, %c0_19], %100 {strides = array<i32>} : memref<1x128xf32, #tpu.memory_space<vmem>>, vector<1x128xf32>,
    return
  }
  func.func @transform_0(%arg0: i32) -> (i32, i32) {
    %c0_i32 = arith.constant 0 : i32
    %c0_i32_0 = arith.constant 0 : i32
    return %c0_i32, %arg0 : i32, i32
  }
  func.func @transform_1(%arg0: i32) -> (i32, i32) {
    %c0_i32 = arith.constant 0 : i32
    %c0_i32_0 = arith.constant 0 : i32
    %c0_i32_1 = arith.constant 0 : i32
    return %c0_i32, %c0_i32_0 : i32, i32
  }
  func.func @transform_2(%arg0: i32) -> (i32, i32) {
    %c0_i32 = arith.constant 0 : i32
    %c0_i32_0 = arith.constant 0 : i32
    %c0_i32_1 = arith.constant 0 : i32
    return %c0_i32, %c0_i32_0 : i32, i32
  }
  func.func @transform_3(%arg0: i32) -> (i32, i32) {
    %c0_i32 = arith.constant 0 : i32
    %c0_i32_0 = arith.constant 0 : i32
    return %c0_i32, %arg0 : i32, i32
  }
}

</mosaic_0001>

<bundles_post_ra>
// kernel: lstm_forward.1
= control target key start
LH: loop header
LB: loop body
LE: loop exit
PB: predicated region body
PF: predicated region fallthrough
CT: control target
= control target key end

     0   :  { %v86_v0 = vlaneseq  ;;  %v744_v1 = vmov 0   ;;  %vm216_vm0 = vcmask 130048   ;;  %s1016_s2 = inlined_call_operand.vmem [shape: f32[177,1], index: 2, kind: input, shape index: {}]   ;;  %s1017_s0 = inlined_call_operand.vmem [shape: f32[3,128], index: 0, kind: input, shape index: {}]   ;;  %s1018_s1 = inlined_call_operand.vmem [shape: f32[64,16], index: 1, kind: input, shape index: {}]   ;;  %s1019_s3 = inlined_call_operand.vmem [shape: f32[1,128], index: 3, kind: output, shape index: {}]  }
   0x1   :  { %683 = vset.pattern.permute.xlu1 %v744_v1  ;;  %682 = vset.pattern.permute.xlu0 %v744_v1  ;;  %v25_v2 = vld [vmem:[%s1016_s2 + $0x10] sm:$0xff]  ;;  %v23_v3 = vld [vmem:[%s1016_s2] sm:$0xff]  ;;  %v26_v5 = vld [vmem:[%s1016_s2 + $0x18] sm:$0xff] }
   0x2   :  { %58 = vperm.xlu1 %683, %v25_v2   ;;  %48 = vperm.xlu0 %682, %v23_v3   ;;  %v87_v4 = vshrl.u32 %v86_v0, 7  ;;  %v24_v6 = vld [vmem:[%s1016_s2 + $0x8] sm:$0xff]  ;;  %v31_v10 = vld [vmem:[%s1016_s2 + $0x40] sm:$0xff]  ;;  %v34_v14 = vld [vmem:[%s1016_s2 + $0x58] sm:$0xff] }
   0x3   :  { %v32_v9 = vld [vmem:[%s1016_s2 + $0x48] sm:$0xff]  ;;  %v14_v11 = vld [vmem:[%s1017_s0] sm:$0x7]  ;;  %v33_v15 = vld [vmem:[%s1016_s2 + $0x50] sm:$0xff] }
   0x4   :  { %v198_v7 = vsub.s32 1, %v87_v4  ;;  %v406_v8 = vsub.s32 2, %v87_v4  ;;  %v30_v16 = vld [vmem:[%s1016_s2 + $0x38] sm:$0xff]  ;;  %v29_v17 = vld [vmem:[%s1016_s2 + $0x30] sm:$0xff]  ;;  %v28_v20 = vld [vmem:[%s1016_s2 + $0x28] sm:$0xff]  ;;  %v88_v32 = vsub.s32 0, %v87_v4 }
   0x5   :  { %v38_v18 = vld [vmem:[%s1016_s2 + $0x78] sm:$0xff]  ;;  %v37_v19 = vld [vmem:[%s1016_s2 + $0x70] sm:$0xff]  ;;  %v27_v21 = vld [vmem:[%s1016_s2 + $0x20] sm:$0xff] }
   0x6   :  { %63 = vperm.xlu1 %683, %v26_v5   ;;  %53 = vperm.xlu0 %682, %v24_v6   ;;  %v786_v12 = vrot.slane %v14_v11, %v198_v7  ;;  %v788_v13 = vrot.slane %v14_v11, %v406_v8  ;;  %v36_v22 = vld [vmem:[%s1016_s2 + $0x68] sm:$0xff]  ;;  %v35_v23 = vld [vmem:[%s1016_s2 + $0x60] sm:$0xff]  ;;  %v42_v26 = vld [vmem:[%s1016_s2 + $0x98] sm:$0xff]  ;;  %v850_v39 = vrot.slane %v14_v11, %v88_v32 }
   0x7   :  { %v40_v24 = vld [vmem:[%s1016_s2 + $0x88] sm:$0xff]  ;;  %v39_v25 = vld [vmem:[%s1016_s2 + $0x80] sm:$0xff]  ;;  %v41_v27 = vld [vmem:[%s1016_s2 + $0x90] sm:$0xff] }
   0x8   :  { %v44_v28 = vld [vmem:[%s1016_s2 + $0xa8] sm:$0xff]  ;;  %v43_v29 = vld [vmem:[%s1016_s2 + $0xa0] sm:$0xff]  ;;  %v45_v30 = vld [vmem:[%s1016_s2 + $0xb0] sm:$0x1] }
   0x9   :  { %v15_v31 = vld [vmem:[%s1018_s1] sm:$0xff] }
   0xa   :  { %105 = vperm.xlu1 %683, %v32_v9   ;;  %100 = vperm.xlu0 %682, %v31_v10  }
   0xb   :  { %645 = vmatprep.mubr.msk.f32.mxu0 %vm216_vm0, %v15_v31  ;;  %661 = vmatprep.mubr.msk.f32.mxu1 %vm216_vm0, %v15_v31 }
   0xe   :  { %115 = vperm.xlu1 %683, %v34_v14   ;;  %110 = vperm.xlu0 %682, %v33_v15  }
  0x12   :  { %83 = vperm.xlu1 %683, %v30_v16   ;;  %78 = vperm.xlu0 %682, %v29_v17  }
  0x16   :  { %135 = vperm.xlu1 %683, %v38_v18   ;;  %130 = vperm.xlu0 %682, %v37_v19  }
  0x1a   :  { %73 = vperm.xlu1 %683, %v28_v20   ;;  %68 = vperm.xlu0 %682, %v27_v21  }
  0x1e   :  { %125 = vperm.xlu1 %683, %v36_v22   ;;  %120 = vperm.xlu0 %682, %v35_v23  }
  0x22   :  { %189 = vperm.xlu1 %683, %v40_v24   ;;  %184 = vperm.xlu0 %682, %v39_v25  }
  0x26   :  { %397 = vperm.xlu1 %683, %v42_v26   ;;  %392 = vperm.xlu0 %682, %v41_v27  }
  0x2a   :  { %580 = vperm.xlu1 %683, %v44_v28   ;;  %575 = vperm.xlu0 %682, %v43_v29  }
  0x2e   :  { %596 = vperm.xlu0 %682, %v45_v30  }
  0x81   :  { %v59_v33 = vpop.permute.xlu1 %58  ;;  %v49_v34 = vpop.permute.xlu0 %48 }
  0x82   :  { %v202_v35 = vmul.f32 %v786_v12, %v59_v33  ;;  %v410_v36 = vmul.f32 %v788_v13, %v59_v33  ;;  %v200_v37 = vmul.f32 %v786_v12, %v49_v34  ;;  %v408_v38 = vmul.f32 %v788_v13, %v49_v34 }
  0x83   :  { %v90_v46 = vmul.f32 %v850_v39, %v49_v34  ;;  %v92_v56 = vmul.f32 %v850_v39, %v59_v33 }
  0x85   :  { %v64_v40 = vpop.permute.xlu1 %63  ;;  %v54_v41 = vpop.permute.xlu0 %53 }
  0x86   :  { %v203_v42 = vmul.f32 %v786_v12, %v64_v40  ;;  %v411_v43 = vmul.f32 %v788_v13, %v64_v40  ;;  %v201_v44 = vmul.f32 %v786_v12, %v54_v41  ;;  %v409_v45 = vmul.f32 %v788_v13, %v54_v41 }
  0x87   :  { %v91_v47 = vmul.f32 %v850_v39, %v54_v41  ;;  %v93_v57 = vmul.f32 %v850_v39, %v64_v40 }
  0x89   :  { %v106_v48 = vpop.permute.xlu1 %105  ;;  %v101_v49 = vpop.permute.xlu0 %100 }
  0x8a   :  { %v139_v50 = vadd.f32 %v106_v48, %v91_v47  ;;  %v138_v51 = vadd.f32 %v101_v49, %v90_v46  ;;  %v858_v52 = vadd.f32 %v201_v44, %v106_v48  ;;  %v860_v53 = vadd.f32 %v200_v37, %v101_v49 }
  0x8b   :  { %v862_v54 = vadd.f32 %v409_v45, %v106_v48  ;;  %v864_v55 = vadd.f32 %v408_v38, %v101_v49 }
  0x8c   :  { %v147_v58 = vmul.f32 0.5, %v139_v50  ;;  %v146_v59 = vmul.f32 0.5, %v138_v51 }
  0x8d   :  { %v116_v60 = vpop.permute.xlu1 %115  ;;  %v111_v61 = vpop.permute.xlu0 %110 }
  0x8e   :  { %v141_v62 = vadd.f32 %v116_v60, %v93_v57  ;;  %v140_v63 = vadd.f32 %v111_v61, %v92_v56  ;;  %v868_v0 = vadd.f32 %v203_v42, %v116_v60  ;;  %684 = vtanh.f32 %v147_v58 }
  0x8f   :  { %v870_v1 = vadd.f32 %v202_v35, %v111_v61  ;;  %v872_v2 = vadd.f32 %v411_v43, %v116_v60  ;;  %v874_v3 = vadd.f32 %v410_v36, %v111_v61  ;;  %686 = vtanh.f32 %v146_v59 }
  0x90   :  { %v149_v4 = vmul.f32 0.5, %v141_v62  ;;  %v148_v5 = vmul.f32 0.5, %v140_v63 }
  0x91   :  { %v84_v6 = vpop.permute.xlu1 %83  ;;  %v79_v7 = vpop.permute.xlu0 %78 }
  0x92   :  { %688 = vtanh.f32 %v149_v4  ;;  %v207_v8 = vmul.f32 %v786_v12, %v84_v6  ;;  %v415_v9 = vmul.f32 %v788_v13, %v84_v6  ;;  %v206_v10 = vmul.f32 %v786_v12, %v79_v7 }
  0x93   :  { %690 = vtanh.f32 %v148_v5  ;;  %v414_v11 = vmul.f32 %v788_v13, %v79_v7  ;;  %v97_v14 = vmul.f32 %v850_v39, %v84_v6  ;;  %v96_v15 = vmul.f32 %v850_v39, %v79_v7 }
  0x95   :  { %v136_v16 = vpop.permute.xlu1 %135  ;;  %v131_v17 = vpop.permute.xlu0 %130 }
  0x96   :  { %v145_v18 = vadd.f32 %v136_v16, %v97_v14  ;;  %v144_v19 = vadd.f32 %v131_v17, %v96_v15  ;;  %v882_v20 = vadd.f32 %v207_v8, %v136_v16  ;;  %v884_v21 = vadd.f32 %v206_v10, %v131_v17 }
  0x97   :  { %v886_v22 = vadd.f32 %v415_v9, %v136_v16  ;;  %v888_v23 = vadd.f32 %v414_v11, %v131_v17  ;;  %v919_v17 = vld [vmem:[%s1018_s1 + $0x8] sm:$0xff] }
  0x98   :  { %692 = vtanh.f32 %v145_v18  ;;  %v685_v24 = vpop.eup %684  ;;  %v924_v18 = vld [vmem:[%s1018_s1 + $0x10] sm:$0xff] }
  0x99   :  { %694 = vtanh.f32 %v144_v19  ;;  %v74_v25 = vpop.permute.xlu1 %73  ;;  %v69_v26 = vpop.permute.xlu0 %68  ;;  %v159_v36 = vmul.f32 0.5, %v685_v24  ;;  %v933_v19 = vld [vmem:[%s1018_s1 + $0x18] sm:$0xff]  ;;  %v938_v24 = vld [vmem:[%s1018_s1 + $0x20] sm:$0xff] }
  0x9a   :  { %v687_v27 = vpop.eup %686  ;;  %v205_v28 = vmul.f32 %v786_v12, %v74_v25  ;;  %v413_v29 = vmul.f32 %v788_v13, %v74_v25  ;;  %v204_v30 = vmul.f32 %v786_v12, %v69_v26  ;;  %v412_v31 = vmul.f32 %v788_v13, %v69_v26 }
  0x9b   :  { %v95_v33 = vmul.f32 %v850_v39, %v74_v25  ;;  %v94_v34 = vmul.f32 %v850_v39, %v69_v26  ;;  %v158_v37 = vmul.f32 0.5, %v687_v27  ;;  %v165_v50 = vadd.f32 0.5, %v159_v36  ;;  %v947_v25 = vld [vmem:[%s1018_s1 + $0x28] sm:$0xff]  ;;  %v952_v26 = vld [vmem:[%s1018_s1 + $0x30] sm:$0xff]  ;;  %v961_v27 = vld [vmem:[%s1018_s1 + $0x38] sm:$0xff] }
  0x9c   :  { %v689_v32 = vpop.eup %688 }
  0x9d   :  { %v691_v35 = vpop.eup %690  ;;  %v161_v38 = vmul.f32 0.5, %v689_v32  ;;  %v126_v40 = vpop.permute.xlu1 %125  ;;  %v164_v56 = vadd.f32 0.5, %v158_v37 }
  0x9e   :  { %v121_v41 = vpop.permute.xlu0 %120  ;;  %v160_v42 = vmul.f32 0.5, %v691_v35  ;;  %v143_v43 = vadd.f32 %v126_v40, %v95_v33  ;;  %v896_v45 = vadd.f32 %v205_v28, %v126_v40  ;;  %v900_v13 = vadd.f32 %v413_v29, %v126_v40 }
  0x9f   :  { %v142_v44 = vadd.f32 %v121_v41, %v94_v34  ;;  %v167_v46 = vadd.f32 0.5, %v161_v38  ;;  %v898_v12 = vadd.f32 %v204_v30, %v121_v41  ;;  %v902_v47 = vadd.f32 %v412_v31, %v121_v41 }
  0xa0   :  { %v166_v48 = vadd.f32 0.5, %v160_v42  ;;  %v151_v39 = vmul.f32 0.5, %v143_v43 }
  0xa1   :  { %v150_v49 = vmul.f32 0.5, %v142_v44  ;;  %v173_v58 = vmul.f32 0.0, %v167_v46 }
  0xa2   :  { %v693_v51 = vpop.eup %692  ;;  %696 = vtanh.f32 %v151_v39  ;;  %v172_v60 = vmul.f32 0.0, %v166_v48 }
  0xa3   :  { %v695_v57 = vpop.eup %694  ;;  %v175_v59 = vmul.f32 %v693_v51, %v165_v50  ;;  %698 = vtanh.f32 %v150_v49 }
  0xa4   :  { %v174_v61 = vmul.f32 %v695_v57, %v164_v56 }
  0xa5   :  { %v904_v62 = vadd.f32 %v175_v59, %v173_v58 }
  0xa6   :  { %v906_v63 = vadd.f32 %v174_v61, %v172_v60 }
  0xa7   :  { %700 = vtanh.f32 %v904_v62 }
  0xa8   :  { %702 = vtanh.f32 %v906_v63 }
  0xac   :  { %v697_v4 = vpop.eup %696 }
  0xad   :  { %v699_v5 = vpop.eup %698  ;;  %v163_v6 = vmul.f32 0.5, %v697_v4 }
  0xae   :  { %v162_v7 = vmul.f32 0.5, %v699_v5 }
  0xaf   :  { %v169_v8 = vadd.f32 0.5, %v163_v6 }
  0xb0   :  { %v168_v9 = vadd.f32 0.5, %v162_v7 }
  0xb1   :  { %v701_v10 = vpop.eup %700 }
  0xb2   :  { %v703_v11 = vpop.eup %702  ;;  %v910_v14 = vmul.f32 %v701_v10, %v169_v8 }
  0xb3   :  { %v912_v15 = vmul.f32 %v703_v11, %v168_v9 }
  0xb5   :  { %v673_v16 = vpack.c.bf16 %v910_v14, %v912_v15 }
  0xb7   :  { %674 = vmatprep.subr.bf16.mxu0 %v673_v16 }
  0xb8   :  { %676 = vmatpush3.bf16.msra.mxu0 %v673_v16 }
  0xbb   :  { %646 = vmatmul.mubr.msk.f32.vlgmr.msra.gmra.mrb[0].mxu0 %vm216_vm0, %v919_v17 }
  0xbc   :  { %648 = vmatprep.mubr.msk.f32.mxu0 %vm216_vm0, %v924_v18 }
  0xbf   :  { %649 = vmatmul.mubr.msk.f32.gmra.mrb[2].mxu0 %vm216_vm0, %v933_v19 }
  0xc0   :  { %651 = vmatprep.mubr.msk.f32.mxu0 %vm216_vm0, %v938_v24 }
  0xc3   :  { %652 = vmatmul.mubr.msk.f32.gmra.mrb[4].mxu0 %vm216_vm0, %v947_v25 }
  0xc4   :  { %654 = vmatprep.mubr.msk.f32.mxu0 %vm216_vm0, %v952_v26 }
  0xc7   :  { %655 = vmatmul.mubr.msk.f32.gmra.mrb[6].mxu0 %vm216_vm0, %v961_v27 }
 0x18e   :  { %v647_v28 = vpop.f32.mrb[0].mxu0 }
 0x18f   :  { %v347_v29 = vadd.f32 %v647_v28, %v858_v52  ;;  %v307_v30 = vpop.f32.mrb[1].mxu0  ;;  %v190_v28 = vpop.permute.xlu1 %189 }
 0x190   :  { %v346_v31 = vadd.f32 %v307_v30, %v860_v53  ;;  %v185_v30 = vpop.permute.xlu0 %184 }
 0x191   :  { %v355_v32 = vmul.f32 0.5, %v347_v29 }
 0x192   :  { %v354_v33 = vmul.f32 0.5, %v346_v31  ;;  %v650_v34 = vpop.f32.mrb[2].mxu0 }
 0x193   :  { %v349_v35 = vadd.f32 %v650_v34, %v868_v0  ;;  %v317_v36 = vpop.f32.mrb[3].mxu0  ;;  %704 = vtanh.f32 %v355_v32  ;;  %v398_v34 = vpop.permute.xlu1 %397 }
 0x194   :  { %v348_v37 = vadd.f32 %v317_v36, %v870_v1  ;;  %706 = vtanh.f32 %v354_v33  ;;  %v193_v36 = vmul.f32 %v190_v28, %v910_v14 }
 0x195   :  { %v357_v38 = vmul.f32 0.5, %v349_v35 }
 0x196   :  { %v356_v40 = vmul.f32 0.5, %v348_v37  ;;  %v653_v41 = vpop.f32.mrb[4].mxu0  ;;  %v393_v37 = vpop.permute.xlu0 %392 }
 0x197   :  { %708 = vtanh.f32 %v357_v38  ;;  %v351_v42 = vadd.f32 %v653_v41, %v896_v45  ;;  %v327_v52 = vpop.f32.mrb[5].mxu0 }
 0x198   :  { %710 = vtanh.f32 %v356_v40  ;;  %v350_v53 = vadd.f32 %v327_v52, %v898_v12  ;;  %v192_v40 = vmul.f32 %v185_v30, %v912_v15 }
 0x199   :  { %v359_v39 = vmul.f32 0.5, %v351_v42 }
 0x19a   :  { %v656_v43 = vpop.f32.mrb[6].mxu0  ;;  %v358_v50 = vmul.f32 0.5, %v350_v53 }
 0x19b   :  { %v353_v44 = vadd.f32 %v656_v43, %v882_v20  ;;  %v337_v46 = vpop.f32.mrb[7].mxu0 }
 0x19c   :  { %v352_v0 = vadd.f32 %v337_v46, %v884_v21 }
 0x19d   :  { %712 = vtanh.f32 %v353_v44  ;;  %v705_v1 = vpop.eup %704 }
 0x19e   :  { %714 = vtanh.f32 %v352_v0  ;;  %v707_v48 = vpop.eup %706  ;;  %v367_v56 = vmul.f32 0.5, %v705_v1 }
 0x19f   :  { %v366_v57 = vmul.f32 0.5, %v707_v48  ;;  %716 = vtanh.f32 %v359_v39 }
 0x1a0   :  { %718 = vtanh.f32 %v358_v50  ;;  %v373_v20 = vadd.f32 0.5, %v367_v56 }
 0x1a1   :  { %v709_v49 = vpop.eup %708  ;;  %v372_v61 = vadd.f32 0.5, %v366_v57 }
 0x1a2   :  { %v711_v51 = vpop.eup %710  ;;  %v369_v45 = vmul.f32 0.5, %v709_v49 }
 0x1a3   :  { %v368_v58 = vmul.f32 0.5, %v711_v51 }
 0x1a4   :  { %v375_v59 = vadd.f32 0.5, %v369_v45 }
 0x1a5   :  { %v374_v12 = vadd.f32 0.5, %v368_v58 }
 0x1a6   :  { %v381_v4 = vmul.f32 %v375_v59, %v904_v62 }
 0x1a7   :  { %v713_v60 = vpop.eup %712  ;;  %v380_v6 = vmul.f32 %v374_v12, %v906_v63 }
 0x1a8   :  { %v715_v21 = vpop.eup %714  ;;  %v383_v5 = vmul.f32 %v713_v60, %v373_v20 }
 0x1a9   :  { %v382_v7 = vmul.f32 %v715_v21, %v372_v61  ;;  %v717_v10 = vpop.eup %716 }
 0x1aa   :  { %v975_v8 = vadd.f32 %v383_v5, %v381_v4  ;;  %v719_v11 = vpop.eup %718  ;;  %v371_v16 = vmul.f32 0.5, %v717_v10 }
 0x1ab   :  { %v977_v9 = vadd.f32 %v382_v7, %v380_v6  ;;  %v370_v29 = vmul.f32 0.5, %v719_v11 }
 0x1ac   :  { %720 = vtanh.f32 %v975_v8  ;;  %v377_v31 = vadd.f32 0.5, %v371_v16 }
 0x1ad   :  { %722 = vtanh.f32 %v977_v9  ;;  %v376_v32 = vadd.f32 0.5, %v370_v29 }
 0x1b6   :  { %v721_v62 = vpop.eup %720 }
 0x1b7   :  { %v723_v33 = vpop.eup %722  ;;  %v389_v63 = vmul.f32 %v721_v62, %v377_v31 }
 0x1b8   :  { %v388_v35 = vmul.f32 %v723_v33, %v376_v32 }
 0x1b9   :  { %v401_v38 = vmul.f32 %v398_v34, %v389_v63 }
 0x1ba   :  { %v400_v41 = vmul.f32 %v393_v37, %v388_v35  ;;  %v677_v42 = vpack.c.bf16 %v389_v63, %v388_v35  ;;  %v581_v63 = vpop.permute.xlu1 %580 }
 0x1bb   :  { %v983_v52 = vadd.f32 %v401_v38, %v193_v36 }
 0x1bc   :  { %v985_v53 = vadd.f32 %v400_v41, %v192_v40  ;;  %678 = vmatprep.subr.bf16.mxu1 %v677_v42 }
 0x1bd   :  { %680 = vmatpush3.bf16.msra.mxu1 %v677_v42 }
 0x1c0   :  { %662 = vmatmul.mubr.msk.f32.vlgmr.msra.gmra.mrb[0].mxu1 %vm216_vm0, %v919_v17 }
 0x1c1   :  { %664 = vmatprep.mubr.msk.f32.mxu1 %vm216_vm0, %v924_v18 }
 0x1c4   :  { %665 = vmatmul.mubr.msk.f32.gmra.mrb[2].mxu1 %vm216_vm0, %v933_v19 }
 0x1c5   :  { %667 = vmatprep.mubr.msk.f32.mxu1 %vm216_vm0, %v938_v24 }
 0x1c8   :  { %668 = vmatmul.mubr.msk.f32.gmra.mrb[4].mxu1 %vm216_vm0, %v947_v25 }
 0x1c9   :  { %670 = vmatprep.mubr.msk.f32.mxu1 %vm216_vm0, %v952_v26 }
 0x1cc   :  { %671 = vmatmul.mubr.msk.f32.gmra.mrb[6].mxu1 %vm216_vm0, %v961_v27 }
 0x293   :  { %v663_v14 = vpop.f32.mrb[0].mxu1 }
 0x294   :  { %v530_v15 = vadd.f32 %v663_v14, %v862_v54  ;;  %v490_v17 = vpop.f32.mrb[1].mxu1 }
 0x295   :  { %v529_v18 = vadd.f32 %v490_v17, %v864_v55 }
 0x296   :  { %v538_v43 = vmul.f32 0.5, %v530_v15 }
 0x297   :  { %v537_v19 = vmul.f32 0.5, %v529_v18  ;;  %v666_v44 = vpop.f32.mrb[2].mxu1 }
 0x298   :  { %v532_v24 = vadd.f32 %v666_v44, %v872_v2  ;;  %v500_v46 = vpop.f32.mrb[3].mxu1  ;;  %724 = vtanh.f32 %v538_v43 }
 0x299   :  { %v531_v25 = vadd.f32 %v500_v46, %v874_v3  ;;  %726 = vtanh.f32 %v537_v19 }
 0x29a   :  { %v540_v0 = vmul.f32 0.5, %v532_v24 }
 0x29b   :  { %v539_v26 = vmul.f32 0.5, %v531_v25  ;;  %v669_v1 = vpop.f32.mrb[4].mxu1 }
 0x29c   :  { %728 = vtanh.f32 %v540_v0  ;;  %v534_v27 = vadd.f32 %v669_v1, %v900_v13  ;;  %v510_v54 = vpop.f32.mrb[5].mxu1 }
 0x29d   :  { %730 = vtanh.f32 %v539_v26  ;;  %v533_v55 = vadd.f32 %v510_v54, %v902_v47 }
 0x29e   :  { %v542_v51 = vmul.f32 0.5, %v534_v27 }
 0x29f   :  { %v672_v48 = vpop.f32.mrb[6].mxu1  ;;  %v541_v45 = vmul.f32 0.5, %v533_v55 }
 0x2a0   :  { %v536_v39 = vadd.f32 %v672_v48, %v886_v22  ;;  %v520_v49 = vpop.f32.mrb[7].mxu1 }
 0x2a1   :  { %v535_v2 = vadd.f32 %v520_v49, %v888_v23 }
 0x2a2   :  { %732 = vtanh.f32 %v536_v39  ;;  %v725_v3 = vpop.eup %724 }
 0x2a3   :  { %734 = vtanh.f32 %v535_v2  ;;  %v727_v50 = vpop.eup %726  ;;  %v550_v58 = vmul.f32 0.5, %v725_v3 }
 0x2a4   :  { %v549_v59 = vmul.f32 0.5, %v727_v50  ;;  %736 = vtanh.f32 %v542_v51 }
 0x2a5   :  { %738 = vtanh.f32 %v541_v45  ;;  %v556_v22 = vadd.f32 0.5, %v550_v58 }
 0x2a6   :  { %v729_v56 = vpop.eup %728  ;;  %v555_v61 = vadd.f32 0.5, %v549_v59 }
 0x2a7   :  { %v731_v57 = vpop.eup %730  ;;  %v552_v13 = vmul.f32 0.5, %v729_v56 }
 0x2a8   :  { %v551_v12 = vmul.f32 0.5, %v731_v57 }
 0x2a9   :  { %v558_v20 = vadd.f32 0.5, %v552_v13 }
 0x2aa   :  { %v557_v47 = vadd.f32 0.5, %v551_v12 }
 0x2ab   :  { %v564_v21 = vmul.f32 %v558_v20, %v975_v8  ;;  %v576_v8 = vpop.permute.xlu0 %575 }
 0x2ac   :  { %v733_v60 = vpop.eup %732  ;;  %v563_v5 = vmul.f32 %v557_v47, %v977_v9 }
 0x2ad   :  { %v735_v23 = vpop.eup %734  ;;  %v566_v4 = vmul.f32 %v733_v60, %v556_v22 }
 0x2ae   :  { %v565_v6 = vmul.f32 %v735_v23, %v555_v61  ;;  %v737_v11 = vpop.eup %736 }
 0x2af   :  { %v568_v7 = vadd.f32 %v566_v4, %v564_v21  ;;  %v739_v16 = vpop.eup %738  ;;  %v554_v28 = vmul.f32 0.5, %v737_v11  ;;  %v597_v18 = vpop.permute.xlu0 %596 }
 0x2b0   :  { %v567_v10 = vadd.f32 %v565_v6, %v563_v5  ;;  %v553_v29 = vmul.f32 0.5, %v739_v16 }
 0x2b1   :  { %740 = vtanh.f32 %v568_v7  ;;  %v560_v30 = vadd.f32 0.5, %v554_v28 }
 0x2b2   :  { %742 = vtanh.f32 %v567_v10  ;;  %v559_v62 = vadd.f32 0.5, %v553_v29 }
 0x2bb   :  { %v741_v31 = vpop.eup %740 }
 0x2bc   :  { %v743_v32 = vpop.eup %742  ;;  %v572_v33 = vmul.f32 %v741_v31, %v560_v30 }
 0x2bd   :  { %v571_v34 = vmul.f32 %v743_v32, %v559_v62 }
 0x2be   :  { %v584_v35 = vmul.f32 %v581_v63, %v572_v33 }
 0x2bf   :  { %v583_v36 = vmul.f32 %v576_v8, %v571_v34 }
 0x2c0   :  { %v586_v9 = vadd.f32 %v584_v35, %v983_v52 }
 0x2c1   :  { %v585_v37 = vadd.f32 %v583_v36, %v985_v53 }
 0x2c3   :  { %v587_v38 = vadd.f32 %v586_v9, %v585_v37 }
 0x2c5   :  { %v588_v40 = vrot.slane %v587_v38, 4 }
 0x2c7   :  { %v589_v41 = vadd.f32 %v588_v40, %v587_v38 }
 0x2c9   :  { %v590_v42 = vrot.slane %v589_v41, 2 }
 0x2cb   :  { %v591_v14 = vadd.f32 %v590_v42, %v589_v41 }
 0x2cd   :  { %v592_v15 = vrot.slane %v591_v14, 1 }
 0x2cf   :  { %v593_v17 = vadd.f32 %v592_v15, %v591_v14 }
 0x2d1   :  { %v599_v43 = vadd.f32 %v597_v18, %v593_v17 }
 0x2d3   :  { %600 = vst [vmem:[%s1019_s3] sm:$0x1] %v599_v43 }

</bundles_post_ra>
